<compile_context>
chip_gen: v7x
topology: tpu7x:2x2x1
jax: 0.10.0
libtpu: 0.0.40
codegen_flags: <defaults>
</compile_context>

<pallas_src>
import functools

import jax
import jax.numpy as jnp
from jax.experimental import pallas as pl
from jax.experimental.pallas import tpu as pltpu


_LANE = 128
_DEFAULT_VMEM_CAP = 64 * 1024 * 1024   # conservative default (v7x per-TC)
_VMEM_HEADROOM = 4 * 1024 * 1024
_USABLE_FRACTION = 0.70                 # leave room for compiler scratch


def _round_up(v, m):
    return ((v + m - 1) // m) * m


def _vmem_capacity_bytes():
    """Physical VMEM per TensorCore; falls back to a safe 64 MiB."""
    try:
        cap = getattr(pltpu.get_tpu_info(), "vmem_capacity_bytes", None)
        if isinstance(cap, int) and cap > 0:
            return cap
    except Exception:
        pass
    return _DEFAULT_VMEM_CAP


def _num_tensorcores_per_device():
    """Best-effort TensorCore count per device (v7x megacore = 2); default 1."""
    try:
        info = pltpu.get_tpu_info()
        for attr in ("num_cores", "core_count", "tensorcores_per_chip",
                     "num_tensorcores"):
            v = getattr(info, attr, None)
            if isinstance(v, int) and v > 0:
                return v
    except Exception:
        pass
    try:
        d = jax.devices()[0]
        for attr in ("num_cores", "core_count"):
            v = getattr(d, attr, None)
            if isinstance(v, int) and v > 0:
                return v
    except Exception:
        pass
    return 1


def _choose_hw_tile(hw, budget_elems, cap=None):
    """Largest multiple-of-128 tile within budget (no divisor constraint)."""
    limit = int(budget_elems) if cap is None else min(int(budget_elems), int(cap))
    limit = max(_LANE, (limit // _LANE) * _LANE)
    return min(limit, _round_up(hw, _LANE))


# --------------------------------------------------------------------------
# Kernels
# --------------------------------------------------------------------------
def _ca_single_pass_kernel(x_ref, w1_ref, b1_ref, w2_ref, b2_ref, o_ref, *,
                           inv_hw, hw, needs_mask):
    """One batch element: pool -> MLP -> sigmoid -> gate, single pass over x."""
    x = x_ref[...]                                                   # (C, HW)

    # AdaptiveAvgPool2d(1): f32-accumulated lane reduction.  When HW is not a
    # multiple of 128 the physical lane tail is masked off so it cannot bias
    # the mean (the gate multiply below needs no mask: padded lanes are never
    # written back).
    if needs_mask:
        lane = jax.lax.broadcasted_iota(jnp.int32, x.shape, 1)
        xs = jnp.where(lane < hw, x, jnp.zeros_like(x))
    else:
        xs = x
    pooled = jnp.sum(xs, axis=-1, keepdims=True,
                     dtype=jnp.float32) * inv_hw                     # (C, 1)

    # Squeeze-excite MLP: O(Cmid*C) flops, hidden under the streaming DMA.
    z1 = jnp.dot(w1_ref[...], pooled,
                 preferred_element_type=jnp.float32) + b1_ref[...]   # (Cmid, 1)
    z1 = jnp.maximum(z1, 0.0)
    z2 = jnp.dot(w2_ref[...], z1,
                 preferred_element_type=jnp.float32) + b2_ref[...]   # (C, 1)
    y = jax.nn.sigmoid(z2)                                           # (C, 1)

    # Channel-wise gating in the input dtype (broadcast (C,1) over (C,HW)).
    o_ref[...] = x * y.astype(o_ref.dtype)


def _pool_sum_kernel(x_ref, s_ref, *, hw, hw_tile, needs_mask):
    """Accumulate per-channel spatial sums across HW tiles (grid axis 1)."""
    t = pl.program_id(1)

    @pl.when(t == 0)
    def _():
        s_ref[...] = jnp.zeros_like(s_ref)

    x = x_ref[...]                                                   # (C, tile)
    if needs_mask:
        # Tail tile may extend past HW (cdiv grid): zero out-of-range lanes.
        lane = jax.lax.broadcasted_iota(jnp.int32, x.shape, 1) + t * hw_tile
        x = jnp.where(lane < hw, x, jnp.zeros_like(x))
    s_ref[...] += jnp.sum(x, axis=-1, keepdims=True, dtype=jnp.float32)


def _gate_kernel(x_ref, g_ref, o_ref):
    """Pure stream-and-multiply: o = x * gate, gate is (C, 1) per batch."""
    o_ref[...] = x_ref[...] * g_ref[...].astype(o_ref.dtype)


# --------------------------------------------------------------------------
# Wrapper
# --------------------------------------------------------------------------
def ca_layer(x, w1, b1, w2, b2, *, max_single_pass_bytes=None, max_hw_tile=None):
    """Channel-attention forward.

    x  : (N, C, H, W)   NCHW, like the PyTorch module
    w1 : (Cmid, C)      Conv2d(C, C//r, 1) weight with the 1x1 kernel squeezed
    b1 : (Cmid,)
    w2 : (C, Cmid)      Conv2d(C//r, C, 1) weight
    b2 : (C,)
    """
    N, C, H, W = x.shape
    Cmid = w1.shape[0]
    HW = H * W
    HW_lanes = _round_up(HW, _LANE)                    # physical lanes in VMEM
    itemsize = jnp.dtype(x.dtype).itemsize
    sub = max(8, 32 // itemsize)                       # sublane packing (8 f32 / 16 bf16)
    C_pad = _round_up(C, sub)

    # No host-side pad / output slice: keeps HBM traffic at 1 read + 1 write.
    x_flat = x.reshape(N, C, HW)
    b1_col = b1.reshape(Cmid, 1)
    b2_col = b2.reshape(C, 1)

    vmem_cap = _vmem_capacity_bytes()
    usable = int(vmem_cap * _USABLE_FRACTION)
    if max_single_pass_bytes is None:
        max_single_pass_bytes = usable

    param_bytes = 2 * 4 * (w1.size + w2.size + b1.size + b2.size)
    block_bytes = C_pad * HW_lanes * itemsize
    # 2 double-buffered input blocks + 2 double-buffered output blocks.
    single_pass_footprint = 4 * block_bytes + param_bytes + (2 << 20)

    # On megacore parts (v7x: 2 TCs/device), a grid of (N,) with N < #cores
    # leaves cores idle; the HW-tiled two-pass path regains parallelism.
    cores = _num_tensorcores_per_device()
    want_core_split = (cores > 1) and (N < cores) and (HW > _LANE)

    use_single_pass = (single_pass_footprint <= max_single_pass_bytes
                       and not want_core_split)

    if use_single_pass:
        # ---- fast path: one read + one write of x --------------------------
        out_flat = pl.pallas_call(
            functools.partial(_ca_single_pass_kernel,
                              inv_hw=1.0 / HW, hw=HW,
                              needs_mask=(HW % _LANE != 0)),
            out_shape=jax.ShapeDtypeStruct((N, C, HW), x.dtype),
            grid_spec=pltpu.PrefetchScalarGridSpec(
                num_scalar_prefetch=0,
                grid=(N,),
                in_specs=[
                    pl.BlockSpec((None, C, HW), lambda b: (b, 0, 0)),   # x
                    pl.BlockSpec((Cmid, C), lambda b: (0, 0)),          # w1
                    pl.BlockSpec((Cmid, 1), lambda b: (0, 0)),          # b1
                    pl.BlockSpec((C, Cmid), lambda b: (0, 0)),          # w2
                    pl.BlockSpec((C, 1), lambda b: (0, 0)),             # b2
                ],
                out_specs=pl.BlockSpec((None, C, HW), lambda b: (b, 0, 0)),
            ),
            compiler_params=pltpu.CompilerParams(
                dimension_semantics=("parallel",),
                vmem_limit_bytes=int(min(single_pass_footprint + _VMEM_HEADROOM,
                                         vmem_cap)),
            ),
        )(x_flat, w1, b1_col, w2, b2_col)
    else:
        # ---- fallback: HW-tiled two-pass ------------------------------------
        # Largest lane-dense tile within the per-step VMEM budget (pass 2 holds
        # 4 x-sized buffers); no requirement that the tile divides HW.
        tile_elem_budget = max(_LANE, (usable // 4) // max(C_pad * itemsize, 1))
        hw_tile = _choose_hw_tile(HW, tile_elem_budget, max_hw_tile)
        if want_core_split:
            # Ensure at least `cores` tiles so the parallel axes cover all TCs.
            core_cap = max(_LANE, _round_up((HW + cores - 1) // cores, _LANE))
            hw_tile = min(hw_tile, core_cap)
        num_tiles = (HW + hw_tile - 1) // hw_tile
        tile_bytes = C_pad * hw_tile * itemsize
        needs_mask = (HW % hw_tile) != 0

        # Pass 1: per-channel spatial sums accumulated across HW tiles.
        sums = pl.pallas_call(
            functools.partial(_pool_sum_kernel, hw=HW, hw_tile=hw_tile,
                              needs_mask=needs_mask),
            out_shape=jax.ShapeDtypeStruct((N, C, 1), jnp.float32),
            grid_spec=pltpu.PrefetchScalarGridSpec(
                num_scalar_prefetch=0,
                grid=(N, num_tiles),
                in_specs=[
                    pl.BlockSpec((None, C, hw_tile), lambda b, t: (b, 0, t)),
                ],
                out_specs=pl.BlockSpec((None, C, 1), lambda b, t: (b, 0, 0)),
            ),
            compiler_params=pltpu.CompilerParams(
                dimension_semantics=("parallel", "arbitrary"),
                vmem_limit_bytes=int(min(2 * tile_bytes + (2 << 20)
                                         + _VMEM_HEADROOM, vmem_cap)),
            ),
        )(x_flat)

        # Squeeze-excite MLP for all N at once in plain XLA (hoisted out of the
        # streaming loop; avoids degenerate 1-lane MXU matmuls per tile).
        pooled = sums[:, :, 0].astype(jnp.float32) * (1.0 / HW)          # (N, C)
        z1 = jnp.maximum(
            pooled @ w1.astype(jnp.float32).T + b1.astype(jnp.float32), 0.0)
        gate = jax.nn.sigmoid(
            z1 @ w2.astype(jnp.float32).T + b2.astype(jnp.float32))      # (N, C)
        gate = gate[:, :, None]                                          # (N, C, 1)

        # Pass 2: stream x and multiply by the per-channel gate (tail stores of
        # the last partial tile are masked by Pallas; no in-kernel mask needed).
        out_flat = pl.pallas_call(
            _gate_kernel,
            out_shape=jax.ShapeDtypeStruct((N, C, HW), x.dtype),
            grid_spec=pltpu.PrefetchScalarGridSpec(
                num_scalar_prefetch=0,
                grid=(N, num_tiles),
                in_specs=[
                    pl.BlockSpec((None, C, hw_tile), lambda b, t: (b, 0, t)),
                    pl.BlockSpec((None, C, 1), lambda b, t: (b, 0, 0)),
                ],
                out_specs=pl.BlockSpec((None, C, hw_tile), lambda b, t: (b, 0, t)),
            ),
            compiler_params=pltpu.CompilerParams(
                dimension_semantics=("parallel", "parallel"),
                vmem_limit_bytes=int(min(4 * tile_bytes + (2 << 20)
                                         + _VMEM_HEADROOM, vmem_cap)),
            ),
        )(x_flat, gate)

    return out_flat.reshape(N, C, H, W)


# --------------------------------------------------------------------------
# Reference + tests
# --------------------------------------------------------------------------
def _reference(x, w1, b1, w2, b2):
    """Plain-JAX reference of the PyTorch forward (f32 math)."""
    xf = x.astype(jnp.float32)
    pooled = jnp.mean(xf, axis=(2, 3))                           # (N, C)
    z1 = jnp.maximum(pooled @ w1.astype(jnp.float32).T + b1, 0.0)
    z2 = jax.nn.sigmoid(z1 @ w2.astype(jnp.float32).T + b2)      # (N, C)
    return xf * z2[:, :, None, None]


def _make_inputs(key, N, C, H, W, reduction, dtype):
    Cmid = max(C // reduction, 1)
    kx, k1, k2, k3, k4 = jax.random.split(key, 5)
    x = jax.random.normal(kx, (N, C, H, W), dtype=jnp.float32).astype(dtype)
    w1 = jax.random.normal(k1, (Cmid, C), dtype=jnp.float32) * 0.1
    b1 = jax.random.normal(k2, (Cmid,), dtype=jnp.float32) * 0.1
    w2 = jax.random.normal(k3, (C, Cmid), dtype=jnp.float32) * 0.1
    b2 = jax.random.normal(k4, (C,), dtype=jnp.float32) * 0.1
    return x, w1, b1, w2, b2


if __name__ == "__main__":
    key = jax.random.PRNGKey(0)
    k0, k1, k2, k3 = jax.random.split(key, 4)

    # 1) Small f32 case, single-pass path (HW = 256, lane-aligned).
    x, w1, b1, w2, b2 = _make_inputs(k0, 2, 32, 16, 16, 16, jnp.float32)
    out = ca_layer(x, w1, b1, w2, b2)
    jax.block_until_ready(out)
    ref = _reference(x, w1, b1, w2, b2)
    assert out.shape == x.shape
    assert jnp.allclose(out, ref, atol=1e-5, rtol=1e-5)

    # 2) Same inputs, forced HW-tiled two-pass path (cross-tile pooled-sum
    #    accumulation + hoisted XLA MLP).
    out_t = ca_layer(x, w1, b1, w2, b2, max_single_pass_bytes=0, max_hw_tile=128)
    jax.block_until_ready(out_t)
    assert jnp.allclose(out_t, ref, atol=1e-5, rtol=1e-5)

    # 3) Non-128-aligned spatial size (HW = 225), single-pass path: exercises
    #    the in-kernel ragged-tail mask with no host-side pad/slice copies.
    xp, w1p, b1p, w2p, b2p = _make_inputs(k1, 2, 32, 15, 15, 16, jnp.float32)
    out_p = ca_layer(xp, w1p, b1p, w2p, b2p)
    jax.block_until_ready(out_p)
    ref_p = _reference(xp, w1p, b1p, w2p, b2p)
    assert out_p.shape == xp.shape
    assert jnp.allclose(out_p, ref_p, atol=1e-5, rtol=1e-5)

    # 4) Non-128-aligned HW, forced two-pass path: exercises the cdiv grid with
    #    a partial tail tile (masked in pass 1, masked stores in pass 2).
    out_pt = ca_layer(xp, w1p, b1p, w2p, b2p,
                      max_single_pass_bytes=0, max_hw_tile=128)
    jax.block_until_ready(out_pt)
    assert jnp.allclose(out_pt, ref_p, atol=1e-5, rtol=1e-5)

    # 5) bf16 activations (f32 weights): pooling accumulates in f32, gating in
    #    bf16 -- no full f32 copy of x kept live inside the kernel.
    xb, w1b, b1b, w2b, b2b = _make_inputs(k2, 1, 32, 16, 16, 16, jnp.bfloat16)
    out_b = ca_layer(xb, w1b, b1b, w2b, b2b)
    jax.block_until_ready(out_b)
    ref_b = _reference(xb, w1b, b1b, w2b, b2b)
    assert out_b.dtype == jnp.bfloat16
    assert jnp.allclose(out_b.astype(jnp.float32), ref_b, atol=5e-2, rtol=5e-2)

    print("KERNEL_OK")
</pallas_src>

<mosaic_0001>
module attributes {stable_mosaic.version = 11 : i64} {
  func.func @_ca_single_pass_kernel(%arg0: i32, %arg1: memref<1x32x256xf32, #tpu.memory_space<vmem>>, %arg2: memref<2x32xf32, #tpu.memory_space<vmem>>, %arg3: memref<2x1xf32, #tpu.memory_space<vmem>>, %arg4: memref<32x2xf32, #tpu.memory_space<vmem>>, %arg5: memref<32x1xf32, #tpu.memory_space<vmem>>, %arg6: memref<1x32x256xf32, #tpu.memory_space<vmem>>) attributes {dimension_semantics = [#tpu.dimension_semantics<parallel>], iteration_bounds = array<i64: 2>, scalar_prefetch = 0 : i64, scratch_operands = 0 : i64, tpu.core_type = #tpu.core_type<tc>, window_params = [{transform_indices = @transform_0, window_bounds = array<i64: 1, 32, 256>}, {pipeline_mode = #tpu.pipeline_mode<synchronous>, transform_indices = @transform_1, window_bounds = array<i64: 2, 32>}, {pipeline_mode = #tpu.pipeline_mode<synchronous>, transform_indices = @transform_2, window_bounds = array<i64: 2, 1>}, {pipeline_mode = #tpu.pipeline_mode<synchronous>, transform_indices = @transform_3, window_bounds = array<i64: 32, 2>}, {pipeline_mode = #tpu.pipeline_mode<synchronous>, transform_indices = @transform_4, window_bounds = array<i64: 32, 1>}, {transform_indices = @transform_5, window_bounds = array<i64: 1, 32, 256>}]} {
    %c0 = arith.constant 0 : index
    %c0_0 = arith.constant 0 : index
    %c0_1 = arith.constant 0 : index
    %0 = vector.load %arg1[%c0, %c0_0, %c0_1] : memref<1x32x256xf32, #tpu.memory_space<vmem>>, vector<1x32x256xf32>
    %1 = vector.shape_cast %0 : vector<1x32x256xf32> to vector<32x256xf32>
    %cst = arith.constant dense<0.000000e+00> : vector<32xf32>
    %2 = vector.multi_reduction <add>, %1, %cst [1] : vector<32x256xf32> to vector<32xf32>
    %3 = vector.shape_cast %2 : vector<32xf32> to vector<32x1xf32>
    %cst_2 = arith.constant 3.906250e-03 : f32
    %4 = vector.broadcast %cst_2 : f32 to vector<32x1xf32>
    %5 = arith.mulf %3, %4 : vector<32x1xf32>
    %c0_3 = arith.constant 0 : index
    %c0_4 = arith.constant 0 : index
    %6 = vector.load %arg2[%c0_3, %c0_4] : memref<2x32xf32, #tpu.memory_space<vmem>>, vector<2x32xf32>
    %cst_5 = arith.constant dense<0.000000e+00> : vector<2x1xf32>
    %7 = tpu.matmul %6, %5, %cst_5 {dimension_numbers = #tpu.dot_dimension_numbers<[1], [0], [0], [1], [0, 0, 1, 1], [], []>} : vector<2x32xf32>, vector<32x1xf32>, vector<2x1xf32> -> vector<2x1xf32>
    %c0_6 = arith.constant 0 : index
    %c0_7 = arith.constant 0 : index
    %8 = vector.load %arg3[%c0_6, %c0_7] : memref<2x1xf32, #tpu.memory_space<vmem>>, vector<2x1xf32>
    %9 = arith.addf %7, %8 : vector<2x1xf32>
    %cst_8 = arith.constant 0.000000e+00 : f32
    %10 = vector.broadcast %cst_8 : f32 to vector<2x1xf32>
    %11 = arith.maximumf %9, %10 : vector<2x1xf32>
    %c0_9 = arith.constant 0 : index
    %c0_10 = arith.constant 0 : index
    %12 = vector.load %arg4[%c0_9, %c0_10] : memref<32x2xf32, #tpu.memory_space<vmem>>, vector<32x2xf32>
    %cst_11 = arith.constant dense<0.000000e+00> : vector<32x1xf32>
    %13 = tpu.matmul %12, %11, %cst_11 {dimension_numbers = #tpu.dot_dimension_numbers<[1], [0], [0], [1], [0, 0, 1, 1], [], []>} : vector<32x2xf32>, vector<2x1xf32>, vector<32x1xf32> -> vector<32x1xf32>
    %c0_12 = arith.constant 0 : index
    %c0_13 = arith.constant 0 : index
    %14 = vector.load %arg5[%c0_12, %c0_13] : memref<32x1xf32, #tpu.memory_space<vmem>>, vector<32x1xf32>
    %15 = arith.addf %13, %14 : vector<32x1xf32>
    %16 = arith.negf %15 : vector<32x1xf32>
    %17 = math.exp %16 : vector<32x1xf32>
    %cst_14 = arith.constant 1.000000e+00 : f32
    %18 = vector.broadcast %cst_14 : f32 to vector<32x1xf32>
    %19 = arith.addf %18, %17 : vector<32x1xf32>
    %20 = arith.divf %18, %19 : vector<32x1xf32>
    %21 = vector.broadcast %20 : vector<32x1xf32> to vector<32x256xf32>
    %22 = arith.mulf %1, %21 : vector<32x256xf32>
    %c0_15 = arith.constant 0 : index
    %c0_16 = arith.constant 0 : index
    %c0_17 = arith.constant 0 : index
    %23 = vector.load %arg6[%c0_15, %c0_16, %c0_17] : memref<1x32x256xf32, #tpu.memory_space<vmem>>, vector<1x32x256xf32>
    %24 = vector.shape_cast %23 : vector<1x32x256xf32> to vector<32x256xf32>
    %25 = vector.shape_cast %22 : vector<32x256xf32> to vector<1x32x256xf32>
    tpu.vector_store %arg6[%c0_15, %c0_16, %c0_17], %25 {strides = array<i32>} : memref<1x32x256xf32, #tpu.memory_space<vmem>>, vector<1x32x256xf32>,
    return
  }
  func.func @transform_0(%arg0: i32) -> (i32, i32, i32) {
    %c0_i32 = arith.constant 0 : i32
    %c0_i32_0 = arith.constant 0 : i32
    %c0_i32_1 = arith.constant 0 : i32
    return %arg0, %c0_i32, %c0_i32_0 : i32, i32, i32
  }
  func.func @transform_1(%arg0: i32) -> (i32, i32) {
    %c0_i32 = arith.constant 0 : i32
    %c0_i32_0 = arith.constant 0 : i32
    %c0_i32_1 = arith.constant 0 : i32
    return %c0_i32, %c0_i32_0 : i32, i32
  }
  func.func @transform_2(%arg0: i32) -> (i32, i32) {
    %c0_i32 = arith.constant 0 : i32
    %c0_i32_0 = arith.constant 0 : i32
    %c0_i32_1 = arith.constant 0 : i32
    return %c0_i32, %c0_i32_0 : i32, i32
  }
  func.func @transform_3(%arg0: i32) -> (i32, i32) {
    %c0_i32 = arith.constant 0 : i32
    %c0_i32_0 = arith.constant 0 : i32
    %c0_i32_1 = arith.constant 0 : i32
    return %c0_i32, %c0_i32_0 : i32, i32
  }
  func.func @transform_4(%arg0: i32) -> (i32, i32) {
    %c0_i32 = arith.constant 0 : i32
    %c0_i32_0 = arith.constant 0 : i32
    %c0_i32_1 = arith.constant 0 : i32
    return %c0_i32, %c0_i32_0 : i32, i32
  }
  func.func @transform_5(%arg0: i32) -> (i32, i32, i32) {
    %c0_i32 = arith.constant 0 : i32
    %c0_i32_0 = arith.constant 0 : i32
    %c0_i32_1 = arith.constant 0 : i32
    return %arg0, %c0_i32, %c0_i32_0 : i32, i32, i32
  }
}

</mosaic_0001>

<bundles_post_ra>
// kernel: tpu_custom_call.1
= control target key start
LH: loop header
LB: loop body
LE: loop exit
PB: predicated region body
PF: predicated region fallthrough
CT: control target
= control target key end

     0   :  { %10 = vsyncpa [#allocation3], 0  ;;  %s1100_s0 = inlined_call_operand.hbm [shape: f32[2,32,256], index: 0, kind: input, shape index: {}]   ;;  %s1101_s1 = inlined_call_operand.vmem [shape: f32[2,32], index: 1, kind: input, shape index: {}]   ;;  %s1102_s2 = inlined_call_operand.vmem [shape: f32[2,1], index: 2, kind: input, shape index: {}]   ;;  %s1103_s3 = inlined_call_operand.vmem [shape: f32[32,2], index: 3, kind: input, shape index: {}]   ;;  %s1104_s4 = inlined_call_operand.vmem [shape: f32[32,1], index: 4, kind: input, shape index: {}]   ;;  %s1105_s5 = inlined_call_operand.hbm [shape: f32[2,32,256], index: 5, kind: output, shape index: {}]  }
   0x1   :  { %12 = vsyncpa [#allocation3 + $0x1], 0 }
   0x2   :  { %13 = vsyncpa [#allocation4], 0 }
   0x3   :  { %15 = vsyncpa [#allocation4 + $0x1], 0  ;;  %s872_s18 = smov 0   ;;  %s874_s19 = smov 0  }
   0x4   :  { %s876_s20 = smov 0   ;;  %s878_s21 = smov 0  }
   0x5 LB: > { %s893_s22 = sadd.s32 4294967295, %s830_s21   ;;  %s601_s23 = sadd.s32 4294967294, %s830_s21   ;;  %s830_s21 = sphi %s878_s21, %s1118_s21   ;;  %s826_s20 = sphi %s876_s20, %s1117_s20   ;;  %s822_s19 = sphi %s874_s19, %s1116_s19   ;;  %s818_s18 = sphi %s872_s18, %s1115_s18  }
   0x6   : > { %s897_s24 = sadd.s32 1, %s830_s21   ;;  %s28_s25 = sadd.s32 1, %s826_s20 }
   0x7   : > { %s25_s26 = ssub.s32 %s830_s21, %s897_s24  ;;  %p35_p0 = scmp.ne.s32.totalorder %s826_s20, %s822_s19 }
   0x8   : > { %p26_p1 = scmp.eq.s32.totalorder %s25_s26, 0  ;;  %p36_p2 = scmp.eq.s32.totalorder %s830_s21, 0 }
   0x9   : > { %p41_p3 = scmp.ne.s32.totalorder %s822_s19, %s818_s18  ;;  %p42_p4 = scmp.eq.s32.totalorder %s893_s22, 0 }
   0xa   : > { %s909_s27 = scalar_select %p26_p1, %s826_s20, %s28_s25  }
   0xb   : > { %p911_p5 = por %p36_p2, %p35_p0  ;;  %p915_p6 = por %p42_p4, %p41_p3 }
   0xc   : > { %p149_p7 = scmp.eq.s32.totalorder %s893_s22, 1  ;;  %p155_p8 = scmp.eq.s32.totalorder %s601_s23, 1 }
   0xd   : > { %p674_p10 = scmp.lt.s32.totalorder %s830_s21, 2  ;;  %s187_s7 = sand.u32 1, %s826_s20  }
   0xe   : > { %p922_p11 = por %p149_p7, %p35_p0  ;;  %p926_p12 = por %p155_p8, %p41_p3 }
   0xf   : > { %s625_s8 = sshll.u32 %s830_s21, 10  ;;  %s604_s9 = sshll.u32 %s187_s7, 6 }
  0x10   : > { %s1109_s30 = scalar_select %p922_p11, 1, 0 }
  0x11   : > { %s1110_s6 = scalar_select %p926_p12, 1, 0 }
  0x12   : > { %s935_s12 = scalar_lea.hbm %s1100_s0, %s625_s8  ;;  %s191_s13 = scalar_lea.vmem [#allocation2], %s604_s9 }
  0x13   : > { %s198_s14 = sshll.u32 %s191_s13, 4  ;;  %p939_p13 = pnand %p674_p10, %p911_p5  ;;  %s943_s14 = int_to_ptr.vmem [resolvable:$true] %s198_s14 }
  0x14   : > { %s945_s16 = scalar_lea.sflag [#allocation3], %s187_s7  ;;  %s734_s17 = scalar_lea.hbm %s935_s12, 1024 }
  0x15   : > { %p735_p0 = scmp.ne.s32.totalorder %s935_s12, %s734_s17  ;;  %p736_p1 = pneg %p939_p13 }
  0x16   : > { %s739_s26 = scalar_lea.hbm %s1100_s0, 2048  ;;  %p740_p4 = scmp.lt.u32.totalorder %s935_s12, %s1100_s0 }
  0x17   : > { %p737_p2 = pnand %p736_p1, %p735_p0  ;;  %p741_p5 = scmp.lt.u32.totalorder %s739_s26, %s734_s17 }
  0x18   : > { %p743_p8 = scmp.lt.u32.totalorder %s734_s17, %s935_s12 }
  0x19   : > { %p738_p3 = pneg %p737_p2  ;;  %p742_p7 = por %p741_p5, %p740_p4 }
  0x1b   : > { %p744_p10 = por %p743_p8, %p742_p7 }
  0x1d   : > { %p745_p9 = pnand %p744_p10, %p738_p3 }
  0x1f   : > { %748 = shalt.err (!%p745_p9)
}
  0x20   : > { %s749_s7 = scalar_lea.vmem %s943_s14, 1024  ;;  %s832_s9 = smov [#allocation2]  }
  0x21   : > { %p750_p0 = scmp.ne.s32.totalorder %s943_s14, %s749_s7  ;;  %s754_s10 = sshll.u32 %s832_s9, 4  ;;  %s755_s10 = int_to_ptr.vmem [resolvable:$false] %s754_s10 }
  0x22   : > { %s756_s11 = scalar_lea.vmem %s755_s10, 2048  ;;  %p757_p11 = scmp.lt.s32.totalorder %s943_s14, %s755_s10 }
  0x23   : > { %p752_p2 = pnand %p750_p0, %p736_p1  ;;  %p758_p4 = scmp.lt.s32.totalorder %s756_s11, %s749_s7 }
  0x25   : > { %p753_p12 = pneg %p752_p2  ;;  %p759_p5 = por %p758_p4, %p757_p11 }
  0x27   : > { %p760_p7 = pnand %p759_p5, %p753_p12 }
  0x29   : > { %763 = shalt.err (!%p760_p7)
}
  0x2a   : > { %s833_s13 = smov 256   ;;  %s834_s17 = smov 16  }
  0x2b   : > { %669 = dma.hbm_to_vmem [thread:$0]  (!%p939_p13), %s935_s12, 1024, %s943_s14, %s945_s16, %s833_s13, %s833_s13, %s834_s17  }
  0x2c   : > { %p607_p9 = scmp.ge.s32.totalorder %s830_s21, 1  ;;  %p206_p1 = scmp.lt.s32.totalorder %s830_s21, 3 }
  0x2e   : > { %p207_p3 = pnand %p607_p9, %p206_p1 }
  0x2f   : > { %s976_s23 = sand.u32 (!%p207_p3), 1, %s822_s19  }
  0x30   : > { %210 = sbr.rel (%p207_p3) target bundleno = 829 (0x33d), region = 40  ;;  %s608_s25 = sshll.u32 (!%p207_p3), %s976_s23, 6 }
  0x31   : > { %s213_s26 = scalar_lea.sflag (!%p207_p3), [#allocation3], %s976_s23  ;;  %s216_s28 = scalar_lea.vmem (!%p207_p3), [#allocation2], %s608_s25 }
  0x37   : > { %809 = dma.done.wait (%p915_p6), %s213_s26, 1024  }
  0x38   : > { %811 = vsyncadd (%p915_p6), %s213_s26, 4294966272  ;;  %v986_v0 = vld [vmem:[%s216_s28 + $0x20] sm:$0xff]  ;;  %v988_v1 = vld [vmem:[%s216_s28 + $0x28] sm:$0xff]  ;;  %v835_v12 = vmov 0.0|0.0   ;;  %vm836_vm0 = vmmov 0   ;;  %v837_v13 = vmov 0.0  }
  0x39   : > { %v990_v2 = vld [vmem:[%s216_s28] sm:$0xff]  ;;  %v257_v3 = vadd.f32 %v988_v1, %v986_v0  ;;  %v994_v4 = vld [vmem:[%s216_s28 + $0x8] sm:$0xff]  ;;  %v996_v5 = vld [vmem:[%s216_s28 + $0x30] sm:$0xff]  ;;  %656 = vmatprep.subr.bf16.mxu0 %v835_v12  ;;  %645 = vmatprep.mubr.msk.f32.mxu0 %vm836_vm0, %v837_v13  ;;  %vm269_vm1 = vcmask 261120   ;;  %vm352_vm2 = vcmask 15360   ;;  %vm365_vm3 = vcmask 1041408  }
  0x3a   : > { %v998_v6 = vld [vmem:[%s216_s28 + $0x38] sm:$0xff]  ;;  %v251_v7 = vadd.f32 %v994_v4, %v990_v2  ;;  %v1002_v8 = vld [vmem:[%s216_s28 + $0x10] sm:$0xff]  ;;  %v267_v24 = vld [vmem:[%s1101_s1] sm:$0x3]  ;;  %v838_v34 = vmov 0   ;;  %s242_s7 = scalar_lea.vmem [#allocation5], %s608_s25 }
  0x3b   : > { %v1004_v9 = vld [vmem:[%s216_s28 + $0x18] sm:$0xff]  ;;  %258 = vadd.xlane.f32.xlu1 %v257_v3  ;;  %v260_v10 = vadd.f32 %v998_v6, %v996_v5  ;;  %v344_v25 = vld [vmem:[%s1103_s3] sm:$0xff]  ;;  %v345_v31 = vld [vmem:[%s1103_s3 + $0x8] sm:$0xff]  ;;  %716 = vset.pattern.permute.xlu0 %v838_v34  ;;  %s528_s9 = sshll.u32 %s242_s7, 4  ;;  %s626_s10 = sshll.u32 %s893_s22, 10  ;;  %s1049_s9 = int_to_ptr.vmem [resolvable:$true] %s528_s9 }
  0x3c   : > { %252 = vadd.xlane.f32.xlu0 %v251_v7  ;;  %v254_v11 = vadd.f32 %v1004_v9, %v1002_v8  ;;  %650 = vmatprep.mubr.msk.f32.mxu1 %vm352_vm2, %v344_v25  ;;  %v268_v26 = vld [vmem:[%s1102_s2] sm:$0x3]  ;;  %v346_v32 = vld [vmem:[%s1103_s3 + $0x10] sm:$0xff]  ;;  %v347_v33 = vld [vmem:[%s1103_s3 + $0x18] sm:$0xff]  ;;  %s1054_s13 = scalar_lea.hbm %s1105_s5, %s626_s10  ;;  %s515_s22 = scalar_lea.sflag [#allocation4], %s976_s23 }
  0x3d   : > { %717 = vset.pattern.permute.xlu1 %v838_v34  ;;  %v349_v35 = vld [vmem:[%s1104_s4 + $0x8] sm:$0xff]  ;;  %v348_v36 = vld [vmem:[%s1104_s4] sm:$0xff]  ;;  %v351_v41 = vld [vmem:[%s1104_s4 + $0x18] sm:$0xff]  ;;  %s764_s17 = scalar_lea.vmem %s1049_s9, 1024  ;;  %p1112_p11 = scmp.ne.s32.totalorder %s1109_s30, 0 }
  0x3e   : > { %v350_v43 = vld [vmem:[%s1104_s4 + $0x10] sm:$0xff]  ;;  %p765_p6 = scmp.ne.s32.totalorder %s1049_s9, %s764_s17  ;;  %s839_s26 = smov [#allocation5]  }
  0x3f   : > { %261 = vadd.xlane.f32.xlu1 %v260_v10  ;;  %s768_s28 = sshll.u32 %s839_s26, 4  ;;  %s769_s28 = int_to_ptr.vmem [resolvable:$false] %s768_s28 }
  0x40   : > { %255 = vadd.xlane.f32.xlu0 %v254_v11  ;;  %p766_p12 = pnand %p765_p6, %p1112_p11  ;;  %s770_s29 = scalar_lea.vmem %s769_s28, 2048 }
  0x41   : > { %p771_p8 = scmp.lt.s32.totalorder %s1049_s9, %s769_s28  ;;  %p772_p10 = scmp.lt.s32.totalorder %s770_s29, %s764_s17 }
  0x42   : > { %p767_p13 = pneg %p766_p12 }
  0x43   : > { %p773_p0 = por %p772_p10, %p771_p8 }
  0x45   : > { %p774_p2 = pnand %p773_p0, %p767_p13 }
  0xc8   : > { %v259_v14 = vpop.xlane.xlu1 %258 }
  0xc9   : > { %v253_v15 = vpop.xlane.xlu0 %252  ;;  %v265_v20 = vmul.f32 0.00390625, %v259_v14 }
  0xca   : > { %v263_v18 = vmul.f32 0.00390625, %v253_v15 }
  0xcc   : > { %v262_v16 = vpop.xlane.xlu1 %261 }
  0xcd   : > { %v256_v17 = vpop.xlane.xlu0 %255  ;;  %v266_v21 = vmul.f32 0.00390625, %v262_v16 }
  0xce   : > { %v264_v19 = vmul.f32 0.00390625, %v256_v17 }
  0xcf   : > { %v660_v23 = vpack.c.bf16 %v266_v21, %v265_v20 }
  0xd0   : > { %v657_v22 = vpack.c.bf16 %v264_v19, %v263_v18 }
  0xd2   : > { %658 = vmatpush3.bf16.msra.mxu0 %v657_v22 }
  0xd3   : > { %659 = vmatprep.subr.bf16.mxu0 %v835_v12 }
  0xd6   : > { %661 = vmatpush3.bf16.msra.mxu0 %v660_v23 }
  0xd9   : > { %646 = vmatmul.mubr.msk.f32.vlgmr.msra.gmra.mrb[0].mxu0 %vm269_vm1, %v267_v24 }
 0x1ac   : > { %v339_v27 = vpop.f32.mrb[0].mxu0 }
 0x1ad   : > { %v340_v28 = vadd.f32 %v339_v27, %v268_v26  ;;  %v647_v29 = vpop.f32.mrb[1].mxu0 }
 0x1af   : > { %v343_v30 = vmax.f32 %v340_v28, 0.0 }
 0x1b1   : > { %648 = vmatprep.subr.msk.mxu1 %vm365_vm3, %v343_v30 }
 0x1b2   : > { %649 = vmatpush3.msk.msra.mxu1 %vm365_vm3, %v343_v30 }
 0x1b3   : > { %651 = vmatmul.mubr.msk.f32.vlgmr.msra.gmra.mrb[0].mxu1 %vm352_vm2, %v345_v31 }
 0x1b4   : > { %653 = vmatprep.mubr.msk.f32.mxu1 %vm352_vm2, %v346_v32 }
 0x1b7   : > { %654 = vmatmul.mubr.msk.f32.gmra.mrb[2].mxu1 %vm352_vm2, %v347_v33 }
 0x286   : > { %v652_v37 = vpop.f32.mrb[0].mxu1 }
 0x287   : > { %v441_v38 = vadd.f32 %v652_v37, %v349_v35  ;;  %v435_v39 = vpop.f32.mrb[1].mxu1 }
 0x288   : > { %v436_v40 = vadd.f32 %v435_v39, %v348_v36 }
 0x289   : > { %v617_v42 = vmul.f32 -1.442695, %v441_v38 }
 0x28a   : > { %v616_v44 = vmul.f32 -1.442695, %v436_v40  ;;  %v655_v45 = vpop.f32.mrb[2].mxu1 }
 0x28b   : > { %718 = vpow2.f32 %v617_v42  ;;  %v451_v46 = vadd.f32 %v655_v45, %v351_v41  ;;  %v445_v47 = vpop.f32.mrb[3].mxu1 }
 0x28c   : > { %720 = vpow2.f32 %v616_v44  ;;  %v446_v48 = vadd.f32 %v445_v47, %v350_v43 }
 0x28d   : > { %v619_v49 = vmul.f32 -1.442695, %v451_v46 }
 0x28e   : > { %v618_v50 = vmul.f32 -1.442695, %v446_v48 }
 0x28f   : > { %722 = vpow2.f32 %v619_v49 }
 0x290   : > { %724 = vpow2.f32 %v618_v50 }
 0x295   : > { %v719_v51 = vpop.eup %718 }
 0x296   : > { %v721_v52 = vpop.eup %720  ;;  %v467_v53 = vadd.f32 1.0, %v719_v51 }
 0x297   : > { %v466_v54 = vadd.f32 1.0, %v721_v52 }
 0x298   : > { %726 = vrcp.f32 %v467_v53 }
 0x299   : > { %v723_v55 = vpop.eup %722  ;;  %728 = vrcp.f32 %v466_v54 }
 0x29a   : > { %v725_v56 = vpop.eup %724  ;;  %v469_v58 = vadd.f32 1.0, %v723_v55 }
 0x29b   : > { %v468_v57 = vadd.f32 1.0, %v725_v56 }
 0x29d   : > { %730 = vrcp.f32 %v468_v57 }
 0x29e   : > { %732 = vrcp.f32 %v469_v58 }
 0x2a2   : > { %v727_v59 = vpop.eup %726 }
 0x2a3   : > { %v729_v60 = vpop.eup %728  ;;  %485 = vperm.xlu1 %717, %v727_v59  }
 0x2a4   : > { %480 = vperm.xlu0 %716, %v729_v60  }
 0x2a7   : > { %v731_v61 = vpop.eup %730 }
 0x2a8   : > { %490 = vperm.xlu1 %717, %v731_v61   ;;  %v733_v62 = vpop.eup %732 }
 0x2ac   : > { %495 = vperm.xlu1 %717, %v733_v62  }
 0x322   : > { %v486_v63 = vpop.permute.xlu1 %485 }
 0x323   : > { %v500_v3 = vmul.f32 %v486_v63, %v1002_v8  ;;  %v501_v7 = vmul.f32 %v486_v63, %v1004_v9  ;;  %v481_v10 = vpop.permute.xlu0 %480 }
 0x324   : > { %v498_v11 = vmul.f32 %v481_v10, %v990_v2  ;;  %v499_v12 = vmul.f32 %v481_v10, %v994_v4 }
 0x325   : > { %508 = vst [vmem:[%s242_s7 + $0x10] sm:$0xff] %v500_v3  ;;  %509 = vst [vmem:[%s242_s7 + $0x18] sm:$0xff] %v501_v7 }
 0x326   : > { %506 = vst [vmem:[%s242_s7] sm:$0xff] %v498_v11  ;;  %507 = vst [vmem:[%s242_s7 + $0x8] sm:$0xff] %v499_v12 }
 0x327   : > { %v491_v13 = vpop.permute.xlu1 %490 }
 0x328   : > { %v502_v14 = vmul.f32 %v491_v13, %v986_v0  ;;  %v503_v8 = vmul.f32 %v491_v13, %v988_v1 }
 0x32a   : > { %510 = vst [vmem:[%s242_s7 + $0x20] sm:$0xff] %v502_v14  ;;  %511 = vst [vmem:[%s242_s7 + $0x28] sm:$0xff] %v503_v8 }
 0x32b   : > { %v496_v2 = vpop.permute.xlu1 %495 }
 0x32c   : > { %v504_v4 = vmul.f32 %v496_v2, %v996_v5  ;;  %v505_v0 = vmul.f32 %v496_v2, %v998_v6 }
 0x32e   : > { %512 = vst [vmem:[%s242_s7 + $0x30] sm:$0xff] %v504_v4  ;;  %513 = vst [vmem:[%s242_s7 + $0x38] sm:$0xff] %v505_v0 }
 0x32f   : > { %777 = shalt.err (!%p774_p2)
}
 0x330   : > { %s778_s12 = scalar_lea.hbm %s1054_s13, 1024  ;;  %s782_s16 = scalar_lea.hbm %s1105_s5, 2048 }
 0x331   : > { %p779_p4 = scmp.ne.s32.totalorder %s1054_s13, %s778_s12  ;;  %p783_p9 = scmp.lt.u32.totalorder %s1054_s13, %s1105_s5 }
 0x332   : > { %p784_p1 = scmp.lt.u32.totalorder %s782_s16, %s778_s12  ;;  %p786_p6 = scmp.lt.u32.totalorder %s778_s12, %s1054_s13 }
 0x333   : > { %p780_p5 = pnand %p779_p4, %p1112_p11 }
 0x334   : > { %p785_p3 = por %p784_p1, %p783_p9 }
 0x335   : > { %p781_p7 = pneg %p780_p5 }
 0x336   : > { %p787_p12 = por %p786_p6, %p785_p3 }
 0x338   : > { %p788_p13 = pnand %p787_p12, %p781_p7 }
 0x33a   : > { %791 = shalt.err (!%p788_p13)
}
 0x33b   : > { %s840_s10 = smov 256   ;;  %s841_s25 = smov 16  }
 0x33c   : > { %664 = dma.vmem_to_hbm [thread:$0]  (%p1112_p11), %s1049_s9, 1024, %s1054_s13, %s515_s22, %s840_s10, %s840_s10, %s841_s25  }
 0x33d PF: > { %s543_s11 = sand.u32 1, %s818_s18   ;;  %p1113_p8 = scmp.ne.s32.totalorder %s1110_s6, 0 }
 0x33e   : > { %p1114_p10 = scmp.ge.s32.totalorder %s830_s21, 2  ;;  %s544_s17 = scalar_lea.sflag [#allocation4], %s543_s11 }
 0x340   : > { %p671_p0 = pnand %p1114_p10, %p1113_p8 }
 0x342   : > { %813 = dma.done.wait (!%p671_p0), %s544_s17, 1024  }
 0x343   : > { %815 = vsyncadd (!%p671_p0), %s544_s17, 4294966272  ;;  %p18_p2 = scmp.ge.s32.totalorder %s897_s24, 4   ;;  %s1115_s18 = smov %s822_s19 }
 0x344   : > { %s1116_s19 = smov %s826_s20  ;;  %s1117_s20 = smov %s909_s27 }
 0x345   : > { %s1118_s21 = smov %s897_s24  ;;  %20 = sbr.rel (!%p18_p2) target bundleno = 5 (0x5), region = 85 }
 0x34c   :  { %549 = vsyncpa [#allocation3], 1 }
 0x34d   :  { %551 = vsyncpa [#allocation3 + $0x1], 1 }
 0x34e   :  { %552 = vsyncpa [#allocation4], 1 }
 0x34f   :  { %554 = vsyncpa [#allocation4 + $0x1], 1 }

</bundles_post_ra>
